<compile_context>
chip_gen: v7x
topology: tpu7x:2x2x1
jax: 0.10.0
libtpu: 0.0.40
codegen_flags: <defaults>
</compile_context>

<pallas_src>
import math

import jax
import jax.numpy as jnp
from jax import lax
from jax.experimental import pallas as pl
from jax.experimental.pallas import tpu as pltpu

# Constants of the original SNN code (STBP-style defaults), fixed in-script.
STEPS = 8
TAU = 0.2
VTH = 0.2
ALPHA = 0.5  # only used by the surrogate gradient (backward); forward does not need it.


def _round_up(x, m):
    return (x + m - 1) // m * m


def _lif_kernel(x_ref, out_ref):
    # x_ref:   (T, bm_rows, 128) float32 VMEM tile.
    # out_ref: (T, bm_rows, 128) bf16 (or f32) VMEM tile.
    T, R, L = x_ref.shape
    strip = math.gcd(R, 64)        # rows per register-resident strip (<= 8 vregs/array)
    n_strips = R // strip

    def body(i, carry):
        r0 = pl.multiple_of(i * strip, strip)
        u = jnp.zeros((strip, L), jnp.float32)
        o = jnp.zeros((strip, L), jnp.float32)   # o_{-1} = 0 (matches out[..., max(step-1,0)] at step 0)
        for t in range(T):                       # static unroll, T is compile-time constant
            w = x_ref[t, pl.ds(r0, strip), :]    # dense (strip, 128) load
            # o is exactly 0/1: TAU*u*(1-o)+w == where(o>0, w, TAU*u + w)
            u = jnp.where(o > 0.0, w, TAU * u + w)
            o = jnp.where(u > VTH, 1.0, 0.0)     # SpikeAct.forward: gt(u - VTH, 0).float()
            out_ref[t, pl.ds(r0, strip), :] = o.astype(out_ref.dtype)
        return carry

    lax.fori_loop(0, n_strips, body, 0)


def lif_spike_tm(x_tm, *, block_lanes=131072, out_dtype=jnp.bfloat16):
    """LIF over a time-major (T, M) activation slab (M % 1024 == 0).

    Returns (T, M) spikes in `out_dtype` (0.0 / 1.0, exact in bf16).  Use this
    entry point directly when the network keeps activations in (T, M) layout.
    """
    T, M = x_tm.shape
    if M % 1024 != 0:
        raise ValueError("lif_spike_tm expects M to be a multiple of 1024; pad upstream")
    x_tm = x_tm.astype(jnp.float32)

    m_rows = M // 128
    bm_rows = max(8, min(block_lanes // 128, m_rows))
    bm_rows -= bm_rows % 8                        # (8, 128) tiling constraint
    grid = (pl.cdiv(m_rows, bm_rows),)            # partial last block handled by Pallas

    out_itemsize = jnp.dtype(out_dtype).itemsize
    cost = pl.CostEstimate(
        flops=5 * T * M,                          # ~5 VALU ops / element / step
        transcendentals=0,
        bytes_accessed=T * M * (4 + out_itemsize),
    )

    out_3d = pl.pallas_call(
        _lif_kernel,
        out_shape=jax.ShapeDtypeStruct((T, m_rows, 128), out_dtype),
        grid_spec=pltpu.PrefetchScalarGridSpec(
            num_scalar_prefetch=0,
            grid=grid,
            in_specs=[pl.BlockSpec((T, bm_rows, 128), lambda i: (0, i, 0))],
            out_specs=pl.BlockSpec((T, bm_rows, 128), lambda i: (0, i, 0)),
        ),
        compiler_params=pltpu.CompilerParams(
            dimension_semantics=("parallel",),        # megacore sharding on v7x
            vmem_limit_bytes=32 * 1024 * 1024,        # safe on v5e/v6e/v7x for ~12 MiB of buffers
        ),
        cost_estimate=cost,
    )(x_tm.reshape(T, m_rows, 128))

    return out_3d.reshape(T, M)


def lif_spike(x, *, block_lanes=131072, out_dtype=jnp.bfloat16):
    """Module-equivalent entry point: x (N,C,H,W,T) -> spikes (N,C,H,W,T).

    Output values are exactly 0/1; pass out_dtype=jnp.float32 to match the
    PyTorch dtype bit-for-bit (bf16 default halves output HBM traffic).
    """
    N, C, H, W, T = x.shape
    M = N * C * H * W

    # One-time relayout to time-major (T, M).  In a full SNN keep activations in
    # this layout between layers so this HBM round-trip is paid once per network,
    # not once per LIFSpike (the op itself is purely HBM-bound).
    x_tm = jnp.transpose(x, (4, 0, 1, 2, 3)).reshape(T, M)
    M_pad = _round_up(M, 1024)
    if M_pad != M:
        # Zero padding is safe: padded lanes never spike (0 > VTH is false).
        x_tm = jnp.pad(x_tm, ((0, 0), (0, M_pad - M)))

    out_tm = lif_spike_tm(x_tm, block_lanes=block_lanes, out_dtype=out_dtype)
    out_tm = out_tm[:, :M]
    return jnp.transpose(out_tm.reshape(T, N, C, H, W), (1, 2, 3, 4, 0))


def _lif_reference(x):
    """Pure-JAX reference matching the PyTorch loop exactly."""

    def step(carry, xt):
        u, o = carry
        u_new = TAU * u * (1.0 - o) + xt
        o_new = (u_new > VTH).astype(jnp.float32)
        return (u_new, o_new), o_new

    x_t = jnp.moveaxis(x, -1, 0)  # (T, N, C, H, W)
    zeros = jnp.zeros(x.shape[:-1], jnp.float32)
    (_, _), outs = lax.scan(step, (zeros, zeros), x_t)
    return jnp.moveaxis(outs, 0, -1)


if __name__ == "__main__":
    key = jax.random.PRNGKey(0)
    N, C, H, W, T = 2, 4, 16, 16, STEPS
    x = jax.random.normal(key, (N, C, H, W, T), dtype=jnp.float32)

    out = jax.block_until_ready(lif_spike(x))
    ref = _lif_reference(x)

    assert out.shape == (N, C, H, W, T)
    assert jnp.allclose(out.astype(jnp.float32), ref, atol=1e-6), \
        "Pallas LIF output mismatch vs reference"

    print("KERNEL_OK")
</pallas_src>

<mosaic_0001>
module attributes {stable_mosaic.version = 11 : i64} {
  func.func @_lif_kernel(%arg0: i32, %arg1: memref<8x16x128xf32, #tpu.memory_space<vmem>>, %arg2: memref<8x16x128xbf16, #tpu.memory_space<vmem>>) attributes {dimension_semantics = [#tpu.dimension_semantics<parallel>], iteration_bounds = array<i64: 1>, scalar_prefetch = 0 : i64, scratch_operands = 0 : i64, tpu.core_type = #tpu.core_type<tc>, window_params = [{transform_indices = @transform_0, window_bounds = array<i64: 8, 16, 128>}, {transform_indices = @transform_1, window_bounds = array<i64: 8, 16, 128>}]} {
    %c0_i32 = arith.constant 0 : i32
    %c16_i32 = arith.constant 16 : i32
    %0 = arith.muli %c0_i32, %c16_i32 : i32
    %1 = tpu.assume_multiple %0, 16 : i32
    %cst = arith.constant 0.000000e+00 : f32
    %2 = vector.broadcast %cst : f32 to vector<16x128xf32>
    %cst_0 = arith.constant 0.000000e+00 : f32
    %3 = vector.broadcast %cst_0 : f32 to vector<16x128xf32>
    %c0 = arith.constant 0 : index
    %4 = arith.index_cast %1 : i32 to index
    %c0_1 = arith.constant 0 : index
    %5 = vector.load %arg1[%c0, %4, %c0_1] : memref<8x16x128xf32, #tpu.memory_space<vmem>>, vector<1x16x128xf32>
    %6 = vector.shape_cast %5 : vector<1x16x128xf32> to vector<16x128xf32>
    %cst_2 = arith.constant 0.000000e+00 : f32
    %7 = vector.broadcast %cst_2 : f32 to vector<16x128xf32>
    %8 = arith.cmpf ogt, %3, %7 : vector<16x128xf32>
    %cst_3 = arith.constant 2.000000e-01 : f32
    %9 = vector.broadcast %cst_3 : f32 to vector<16x128xf32>
    %10 = arith.mulf %9, %2 : vector<16x128xf32>
    %11 = arith.addf %10, %6 : vector<16x128xf32>
    %12 = arith.select %8, %6, %11 : vector<16x128xi1>, vector<16x128xf32>
    %cst_4 = arith.constant 2.000000e-01 : f32
    %13 = vector.broadcast %cst_4 : f32 to vector<16x128xf32>
    %14 = arith.cmpf ogt, %12, %13 : vector<16x128xf32>
    %cst_5 = arith.constant 1.000000e+00 : f32
    %cst_6 = arith.constant 0.000000e+00 : f32
    %15 = vector.broadcast %cst_5 : f32 to vector<16x128xf32>
    %16 = vector.broadcast %cst_6 : f32 to vector<16x128xf32>
    %17 = arith.select %14, %15, %16 : vector<16x128xi1>, vector<16x128xf32>
    %18 = arith.truncf %17 : vector<16x128xf32> to vector<16x128xbf16>
    %c0_7 = arith.constant 0 : index
    %19 = arith.index_cast %1 : i32 to index
    %c0_8 = arith.constant 0 : index
    %20 = vector.load %arg2[%c0_7, %19, %c0_8] : memref<8x16x128xbf16, #tpu.memory_space<vmem>>, vector<1x16x128xbf16>
    %21 = vector.shape_cast %20 : vector<1x16x128xbf16> to vector<16x128xbf16>
    %22 = vector.shape_cast %18 : vector<16x128xbf16> to vector<1x16x128xbf16>
    tpu.vector_store %arg2[%c0_7, %19, %c0_8], %22 {strides = array<i32>} : memref<8x16x128xbf16, #tpu.memory_space<vmem>>, vector<1x16x128xbf16>,
    %c1 = arith.constant 1 : index
    %23 = arith.index_cast %1 : i32 to index
    %c0_9 = arith.constant 0 : index
    %24 = vector.load %arg1[%c1, %23, %c0_9] : memref<8x16x128xf32, #tpu.memory_space<vmem>>, vector<1x16x128xf32>
    %25 = vector.shape_cast %24 : vector<1x16x128xf32> to vector<16x128xf32>
    %cst_10 = arith.constant 0.000000e+00 : f32
    %26 = vector.broadcast %cst_10 : f32 to vector<16x128xf32>
    %27 = arith.cmpf ogt, %17, %26 : vector<16x128xf32>
    %cst_11 = arith.constant 2.000000e-01 : f32
    %28 = vector.broadcast %cst_11 : f32 to vector<16x128xf32>
    %29 = arith.mulf %28, %12 : vector<16x128xf32>
    %30 = arith.addf %29, %25 : vector<16x128xf32>
    %31 = arith.select %27, %25, %30 : vector<16x128xi1>, vector<16x128xf32>
    %cst_12 = arith.constant 2.000000e-01 : f32
    %32 = vector.broadcast %cst_12 : f32 to vector<16x128xf32>
    %33 = arith.cmpf ogt, %31, %32 : vector<16x128xf32>
    %cst_13 = arith.constant 1.000000e+00 : f32
    %cst_14 = arith.constant 0.000000e+00 : f32
    %34 = vector.broadcast %cst_13 : f32 to vector<16x128xf32>
    %35 = vector.broadcast %cst_14 : f32 to vector<16x128xf32>
    %36 = arith.select %33, %34, %35 : vector<16x128xi1>, vector<16x128xf32>
    %37 = arith.truncf %36 : vector<16x128xf32> to vector<16x128xbf16>
    %c1_15 = arith.constant 1 : index
    %38 = arith.index_cast %1 : i32 to index
    %c0_16 = arith.constant 0 : index
    %39 = vector.load %arg2[%c1_15, %38, %c0_16] : memref<8x16x128xbf16, #tpu.memory_space<vmem>>, vector<1x16x128xbf16>
    %40 = vector.shape_cast %39 : vector<1x16x128xbf16> to vector<16x128xbf16>
    %41 = vector.shape_cast %37 : vector<16x128xbf16> to vector<1x16x128xbf16>
    tpu.vector_store %arg2[%c1_15, %38, %c0_16], %41 {strides = array<i32>} : memref<8x16x128xbf16, #tpu.memory_space<vmem>>, vector<1x16x128xbf16>,
    %c2 = arith.constant 2 : index
    %42 = arith.index_cast %1 : i32 to index
    %c0_17 = arith.constant 0 : index
    %43 = vector.load %arg1[%c2, %42, %c0_17] : memref<8x16x128xf32, #tpu.memory_space<vmem>>, vector<1x16x128xf32>
    %44 = vector.shape_cast %43 : vector<1x16x128xf32> to vector<16x128xf32>
    %cst_18 = arith.constant 0.000000e+00 : f32
    %45 = vector.broadcast %cst_18 : f32 to vector<16x128xf32>
    %46 = arith.cmpf ogt, %36, %45 : vector<16x128xf32>
    %cst_19 = arith.constant 2.000000e-01 : f32
    %47 = vector.broadcast %cst_19 : f32 to vector<16x128xf32>
    %48 = arith.mulf %47, %31 : vector<16x128xf32>
    %49 = arith.addf %48, %44 : vector<16x128xf32>
    %50 = arith.select %46, %44, %49 : vector<16x128xi1>, vector<16x128xf32>
    %cst_20 = arith.constant 2.000000e-01 : f32
    %51 = vector.broadcast %cst_20 : f32 to vector<16x128xf32>
    %52 = arith.cmpf ogt, %50, %51 : vector<16x128xf32>
    %cst_21 = arith.constant 1.000000e+00 : f32
    %cst_22 = arith.constant 0.000000e+00 : f32
    %53 = vector.broadcast %cst_21 : f32 to vector<16x128xf32>
    %54 = vector.broadcast %cst_22 : f32 to vector<16x128xf32>
    %55 = arith.select %52, %53, %54 : vector<16x128xi1>, vector<16x128xf32>
    %56 = arith.truncf %55 : vector<16x128xf32> to vector<16x128xbf16>
    %c2_23 = arith.constant 2 : index
    %57 = arith.index_cast %1 : i32 to index
    %c0_24 = arith.constant 0 : index
    %58 = vector.load %arg2[%c2_23, %57, %c0_24] : memref<8x16x128xbf16, #tpu.memory_space<vmem>>, vector<1x16x128xbf16>
    %59 = vector.shape_cast %58 : vector<1x16x128xbf16> to vector<16x128xbf16>
    %60 = vector.shape_cast %56 : vector<16x128xbf16> to vector<1x16x128xbf16>
    tpu.vector_store %arg2[%c2_23, %57, %c0_24], %60 {strides = array<i32>} : memref<8x16x128xbf16, #tpu.memory_space<vmem>>, vector<1x16x128xbf16>,
    %c3 = arith.constant 3 : index
    %61 = arith.index_cast %1 : i32 to index
    %c0_25 = arith.constant 0 : index
    %62 = vector.load %arg1[%c3, %61, %c0_25] : memref<8x16x128xf32, #tpu.memory_space<vmem>>, vector<1x16x128xf32>
    %63 = vector.shape_cast %62 : vector<1x16x128xf32> to vector<16x128xf32>
    %cst_26 = arith.constant 0.000000e+00 : f32
    %64 = vector.broadcast %cst_26 : f32 to vector<16x128xf32>
    %65 = arith.cmpf ogt, %55, %64 : vector<16x128xf32>
    %cst_27 = arith.constant 2.000000e-01 : f32
    %66 = vector.broadcast %cst_27 : f32 to vector<16x128xf32>
    %67 = arith.mulf %66, %50 : vector<16x128xf32>
    %68 = arith.addf %67, %63 : vector<16x128xf32>
    %69 = arith.select %65, %63, %68 : vector<16x128xi1>, vector<16x128xf32>
    %cst_28 = arith.constant 2.000000e-01 : f32
    %70 = vector.broadcast %cst_28 : f32 to vector<16x128xf32>
    %71 = arith.cmpf ogt, %69, %70 : vector<16x128xf32>
    %cst_29 = arith.constant 1.000000e+00 : f32
    %cst_30 = arith.constant 0.000000e+00 : f32
    %72 = vector.broadcast %cst_29 : f32 to vector<16x128xf32>
    %73 = vector.broadcast %cst_30 : f32 to vector<16x128xf32>
    %74 = arith.select %71, %72, %73 : vector<16x128xi1>, vector<16x128xf32>
    %75 = arith.truncf %74 : vector<16x128xf32> to vector<16x128xbf16>
    %c3_31 = arith.constant 3 : index
    %76 = arith.index_cast %1 : i32 to index
    %c0_32 = arith.constant 0 : index
    %77 = vector.load %arg2[%c3_31, %76, %c0_32] : memref<8x16x128xbf16, #tpu.memory_space<vmem>>, vector<1x16x128xbf16>
    %78 = vector.shape_cast %77 : vector<1x16x128xbf16> to vector<16x128xbf16>
    %79 = vector.shape_cast %75 : vector<16x128xbf16> to vector<1x16x128xbf16>
    tpu.vector_store %arg2[%c3_31, %76, %c0_32], %79 {strides = array<i32>} : memref<8x16x128xbf16, #tpu.memory_space<vmem>>, vector<1x16x128xbf16>,
    %c4 = arith.constant 4 : index
    %80 = arith.index_cast %1 : i32 to index
    %c0_33 = arith.constant 0 : index
    %81 = vector.load %arg1[%c4, %80, %c0_33] : memref<8x16x128xf32, #tpu.memory_space<vmem>>, vector<1x16x128xf32>
    %82 = vector.shape_cast %81 : vector<1x16x128xf32> to vector<16x128xf32>
    %cst_34 = arith.constant 0.000000e+00 : f32
    %83 = vector.broadcast %cst_34 : f32 to vector<16x128xf32>
    %84 = arith.cmpf ogt, %74, %83 : vector<16x128xf32>
    %cst_35 = arith.constant 2.000000e-01 : f32
    %85 = vector.broadcast %cst_35 : f32 to vector<16x128xf32>
    %86 = arith.mulf %85, %69 : vector<16x128xf32>
    %87 = arith.addf %86, %82 : vector<16x128xf32>
    %88 = arith.select %84, %82, %87 : vector<16x128xi1>, vector<16x128xf32>
    %cst_36 = arith.constant 2.000000e-01 : f32
    %89 = vector.broadcast %cst_36 : f32 to vector<16x128xf32>
    %90 = arith.cmpf ogt, %88, %89 : vector<16x128xf32>
    %cst_37 = arith.constant 1.000000e+00 : f32
    %cst_38 = arith.constant 0.000000e+00 : f32
    %91 = vector.broadcast %cst_37 : f32 to vector<16x128xf32>
    %92 = vector.broadcast %cst_38 : f32 to vector<16x128xf32>
    %93 = arith.select %90, %91, %92 : vector<16x128xi1>, vector<16x128xf32>
    %94 = arith.truncf %93 : vector<16x128xf32> to vector<16x128xbf16>
    %c4_39 = arith.constant 4 : index
    %95 = arith.index_cast %1 : i32 to index
    %c0_40 = arith.constant 0 : index
    %96 = vector.load %arg2[%c4_39, %95, %c0_40] : memref<8x16x128xbf16, #tpu.memory_space<vmem>>, vector<1x16x128xbf16>
    %97 = vector.shape_cast %96 : vector<1x16x128xbf16> to vector<16x128xbf16>
    %98 = vector.shape_cast %94 : vector<16x128xbf16> to vector<1x16x128xbf16>
    tpu.vector_store %arg2[%c4_39, %95, %c0_40], %98 {strides = array<i32>} : memref<8x16x128xbf16, #tpu.memory_space<vmem>>, vector<1x16x128xbf16>,
    %c5 = arith.constant 5 : index
    %99 = arith.index_cast %1 : i32 to index
    %c0_41 = arith.constant 0 : index
    %100 = vector.load %arg1[%c5, %99, %c0_41] : memref<8x16x128xf32, #tpu.memory_space<vmem>>, vector<1x16x128xf32>
    %101 = vector.shape_cast %100 : vector<1x16x128xf32> to vector<16x128xf32>
    %cst_42 = arith.constant 0.000000e+00 : f32
    %102 = vector.broadcast %cst_42 : f32 to vector<16x128xf32>
    %103 = arith.cmpf ogt, %93, %102 : vector<16x128xf32>
    %cst_43 = arith.constant 2.000000e-01 : f32
    %104 = vector.broadcast %cst_43 : f32 to vector<16x128xf32>
    %105 = arith.mulf %104, %88 : vector<16x128xf32>
    %106 = arith.addf %105, %101 : vector<16x128xf32>
    %107 = arith.select %103, %101, %106 : vector<16x128xi1>, vector<16x128xf32>
    %cst_44 = arith.constant 2.000000e-01 : f32
    %108 = vector.broadcast %cst_44 : f32 to vector<16x128xf32>
    %109 = arith.cmpf ogt, %107, %108 : vector<16x128xf32>
    %cst_45 = arith.constant 1.000000e+00 : f32
    %cst_46 = arith.constant 0.000000e+00 : f32
    %110 = vector.broadcast %cst_45 : f32 to vector<16x128xf32>
    %111 = vector.broadcast %cst_46 : f32 to vector<16x128xf32>
    %112 = arith.select %109, %110, %111 : vector<16x128xi1>, vector<16x128xf32>
    %113 = arith.truncf %112 : vector<16x128xf32> to vector<16x128xbf16>
    %c5_47 = arith.constant 5 : index
    %114 = arith.index_cast %1 : i32 to index
    %c0_48 = arith.constant 0 : index
    %115 = vector.load %arg2[%c5_47, %114, %c0_48] : memref<8x16x128xbf16, #tpu.memory_space<vmem>>, vector<1x16x128xbf16>
    %116 = vector.shape_cast %115 : vector<1x16x128xbf16> to vector<16x128xbf16>
    %117 = vector.shape_cast %113 : vector<16x128xbf16> to vector<1x16x128xbf16>
    tpu.vector_store %arg2[%c5_47, %114, %c0_48], %117 {strides = array<i32>} : memref<8x16x128xbf16, #tpu.memory_space<vmem>>, vector<1x16x128xbf16>,
    %c6 = arith.constant 6 : index
    %118 = arith.index_cast %1 : i32 to index
    %c0_49 = arith.constant 0 : index
    %119 = vector.load %arg1[%c6, %118, %c0_49] : memref<8x16x128xf32, #tpu.memory_space<vmem>>, vector<1x16x128xf32>
    %120 = vector.shape_cast %119 : vector<1x16x128xf32> to vector<16x128xf32>
    %cst_50 = arith.constant 0.000000e+00 : f32
    %121 = vector.broadcast %cst_50 : f32 to vector<16x128xf32>
    %122 = arith.cmpf ogt, %112, %121 : vector<16x128xf32>
    %cst_51 = arith.constant 2.000000e-01 : f32
    %123 = vector.broadcast %cst_51 : f32 to vector<16x128xf32>
    %124 = arith.mulf %123, %107 : vector<16x128xf32>
    %125 = arith.addf %124, %120 : vector<16x128xf32>
    %126 = arith.select %122, %120, %125 : vector<16x128xi1>, vector<16x128xf32>
    %cst_52 = arith.constant 2.000000e-01 : f32
    %127 = vector.broadcast %cst_52 : f32 to vector<16x128xf32>
    %128 = arith.cmpf ogt, %126, %127 : vector<16x128xf32>
    %cst_53 = arith.constant 1.000000e+00 : f32
    %cst_54 = arith.constant 0.000000e+00 : f32
    %129 = vector.broadcast %cst_53 : f32 to vector<16x128xf32>
    %130 = vector.broadcast %cst_54 : f32 to vector<16x128xf32>
    %131 = arith.select %128, %129, %130 : vector<16x128xi1>, vector<16x128xf32>
    %132 = arith.truncf %131 : vector<16x128xf32> to vector<16x128xbf16>
    %c6_55 = arith.constant 6 : index
    %133 = arith.index_cast %1 : i32 to index
    %c0_56 = arith.constant 0 : index
    %134 = vector.load %arg2[%c6_55, %133, %c0_56] : memref<8x16x128xbf16, #tpu.memory_space<vmem>>, vector<1x16x128xbf16>
    %135 = vector.shape_cast %134 : vector<1x16x128xbf16> to vector<16x128xbf16>
    %136 = vector.shape_cast %132 : vector<16x128xbf16> to vector<1x16x128xbf16>
    tpu.vector_store %arg2[%c6_55, %133, %c0_56], %136 {strides = array<i32>} : memref<8x16x128xbf16, #tpu.memory_space<vmem>>, vector<1x16x128xbf16>,
    %c7 = arith.constant 7 : index
    %137 = arith.index_cast %1 : i32 to index
    %c0_57 = arith.constant 0 : index
    %138 = vector.load %arg1[%c7, %137, %c0_57] : memref<8x16x128xf32, #tpu.memory_space<vmem>>, vector<1x16x128xf32>
    %139 = vector.shape_cast %138 : vector<1x16x128xf32> to vector<16x128xf32>
    %cst_58 = arith.constant 0.000000e+00 : f32
    %140 = vector.broadcast %cst_58 : f32 to vector<16x128xf32>
    %141 = arith.cmpf ogt, %131, %140 : vector<16x128xf32>
    %cst_59 = arith.constant 2.000000e-01 : f32
    %142 = vector.broadcast %cst_59 : f32 to vector<16x128xf32>
    %143 = arith.mulf %142, %126 : vector<16x128xf32>
    %144 = arith.addf %143, %139 : vector<16x128xf32>
    %145 = arith.select %141, %139, %144 : vector<16x128xi1>, vector<16x128xf32>
    %cst_60 = arith.constant 2.000000e-01 : f32
    %146 = vector.broadcast %cst_60 : f32 to vector<16x128xf32>
    %147 = arith.cmpf ogt, %145, %146 : vector<16x128xf32>
    %cst_61 = arith.constant 1.000000e+00 : f32
    %cst_62 = arith.constant 0.000000e+00 : f32
    %148 = vector.broadcast %cst_61 : f32 to vector<16x128xf32>
    %149 = vector.broadcast %cst_62 : f32 to vector<16x128xf32>
    %150 = arith.select %147, %148, %149 : vector<16x128xi1>, vector<16x128xf32>
    %151 = arith.truncf %150 : vector<16x128xf32> to vector<16x128xbf16>
    %c7_63 = arith.constant 7 : index
    %152 = arith.index_cast %1 : i32 to index
    %c0_64 = arith.constant 0 : index
    %153 = vector.load %arg2[%c7_63, %152, %c0_64] : memref<8x16x128xbf16, #tpu.memory_space<vmem>>, vector<1x16x128xbf16>
    %154 = vector.shape_cast %153 : vector<1x16x128xbf16> to vector<16x128xbf16>
    %155 = vector.shape_cast %151 : vector<16x128xbf16> to vector<1x16x128xbf16>
    tpu.vector_store %arg2[%c7_63, %152, %c0_64], %155 {strides = array<i32>} : memref<8x16x128xbf16, #tpu.memory_space<vmem>>, vector<1x16x128xbf16>,
    %c1_i32 = arith.constant 1 : i32
    return
  }
  func.func @transform_0(%arg0: i32) -> (i32, i32, i32) {
    %c0_i32 = arith.constant 0 : i32
    %c0_i32_0 = arith.constant 0 : i32
    %c0_i32_1 = arith.constant 0 : i32
    return %c0_i32, %arg0, %c0_i32_0 : i32, i32, i32
  }
  func.func @transform_1(%arg0: i32) -> (i32, i32, i32) {
    %c0_i32 = arith.constant 0 : i32
    %c0_i32_0 = arith.constant 0 : i32
    %c0_i32_1 = arith.constant 0 : i32
    return %c0_i32, %arg0, %c0_i32_0 : i32, i32, i32
  }
}

</mosaic_0001>

<bundles_post_ra>
// kernel: tpu_custom_call.1
= control target key start
LH: loop header
LB: loop body
LE: loop exit
PB: predicated region body
PF: predicated region fallthrough
CT: control target
= control target key end

     0   :  { %6 = vsyncpa [#allocation3], 0  ;;  %s446_s0 = inlined_call_operand.hbm [shape: f32[8,16,128], index: 0, kind: input, shape index: {}]   ;;  %s447_s1 = inlined_call_operand.hbm [shape: bf16[8,16,128], index: 1, kind: output, shape index: {}]  }
   0x1   :  { %7 = vsyncpa [#allocation4], 0  ;;  %s389_s6 = smov [#allocation2]   ;;  %s341_s10 = scalar_lea.hbm %s446_s0, 2048 }
   0x2   :  { %s13_s7 = sshll.u32 %s389_s6, 4  ;;  %p342_p0 = scmp.ne.s32.totalorder %s446_s0, %s341_s10  ;;  %s14_s7 = int_to_ptr.vmem [resolvable:$true] %s13_s7 }
   0x3   :  { %p345_p1 = scmp.lt.u32.totalorder %s341_s10, %s446_s0 }
   0x5   :  { %p347_p2 = pnand %p345_p1, %p342_p0 }
   0x7   :  { %350 = shalt.err (!%p347_p2)
}
   0x8   :  { %s351_s15 = scalar_lea.vmem %s14_s7, 2048  ;;  %p356_p4 = scmp.lt.s32.totalorder %s14_s7, %s14_s7 }
   0x9   :  { %p352_p3 = scmp.ne.s32.totalorder %s14_s7, %s351_s15  ;;  %p357_p5 = scmp.lt.s32.totalorder %s351_s15, %s351_s15 }
   0xb   :  { %p358_p6 = por %p357_p5, %p356_p4 }
   0xd   :  { %p359_p7 = pnand %p358_p6, %p352_p3 }
   0xf   :  { %362 = shalt.err (!%p359_p7)
}
  0x10   :  { %s390_s16 = smov 128   ;;  %s391_s17 = smov 8  }
  0x11   :  { %19 = dma.hbm_to_vmem [thread:$0]  %s446_s0, 2048, %s14_s7, [#allocation3], %s390_s16, %s390_s16, %s391_s17  }
  0x12   :  { %385 = dma.done.wait [#allocation3], 2048  }
  0x13   :  { %386 = vsyncadd [#allocation3], 4294965248  ;;  %v23_v0 = vld [vmem:[#allocation2] sm:$0xff]  ;;  %v24_v1 = vld [vmem:[#allocation2 + $0x8] sm:$0xff]  ;;  %v392_v4 = vmov 0.0   ;;  %s393_s0 = smov [#allocation5]  }
  0x14   :  { %v46_v2 = vld [vmem:[#allocation2 + $0x10] sm:$0xff]  ;;  %vm30_vm0 = vcmp.gt.f32.partialorder %v23_v0, 0.2  ;;  %vm31_vm1 = vcmp.gt.f32.partialorder %v24_v1, 0.2  ;;  %v47_v8 = vld [vmem:[#allocation2 + $0x18] sm:$0xff] }
  0x15   :  { %v50_v3 = vmul.f32 0.2, %v23_v0  ;;  %v32_v5 = vsel %vm30_vm0, 1.0, %v392_v4  ;;  %v33_v6 = vsel %vm31_vm1, 1.0, %v392_v4  ;;  %v51_v7 = vmul.f32 0.2, %v24_v1 }
  0x16   :  { %v311_v9 = vpack.c.bf16 %v33_v6, %v32_v5  ;;  %vm48_vm2 = vcmp.gt.f32.partialorder %v32_v5, 0.0  ;;  %vm49_vm3 = vcmp.gt.f32.partialorder %v33_v6, 0.0  ;;  %v75_v13 = vld [vmem:[#allocation2 + $0x20] sm:$0xff]  ;;  %v76_v16 = vld [vmem:[#allocation2 + $0x28] sm:$0xff]  ;;  %v104_v24 = vld [vmem:[#allocation2 + $0x30] sm:$0xff]  ;;  %s252_s20 = sshll.u32 %s393_s0, 4  ;;  %s253_s20 = int_to_ptr.vmem [resolvable:$true] %s252_s20 }
  0x17   :  { %v52_v10 = vadd.f32 %v50_v3, %v46_v2  ;;  %v53_v11 = vadd.f32 %v51_v7, %v47_v8  ;;  %v105_v27 = vld [vmem:[#allocation2 + $0x38] sm:$0xff]  ;;  %v133_v35 = vld [vmem:[#allocation2 + $0x40] sm:$0xff]  ;;  %v134_v38 = vld [vmem:[#allocation2 + $0x48] sm:$0xff]  ;;  %s363_s21 = scalar_lea.vmem %s253_s20, 1024  ;;  %p368_p9 = scmp.lt.s32.totalorder %s253_s20, %s253_s20 }
  0x18   :  { %312 = vst [vmem:[#allocation5] sm:$0xff] %v311_v9   ;;  %v162_v46 = vld [vmem:[#allocation2 + $0x50] sm:$0xff]  ;;  %v163_v49 = vld [vmem:[#allocation2 + $0x58] sm:$0xff]  ;;  %v191_v57 = vld [vmem:[#allocation2 + $0x60] sm:$0xff]  ;;  %p364_p8 = scmp.ne.s32.totalorder %s253_s20, %s363_s21  ;;  %p369_p10 = scmp.lt.s32.totalorder %s363_s21, %s363_s21 }
  0x19   :  { %v54_v12 = vsel %vm48_vm2, %v46_v2, %v52_v10  ;;  %v55_v14 = vsel %vm49_vm3, %v47_v8, %v53_v11  ;;  %v192_v60 = vld [vmem:[#allocation2 + $0x68] sm:$0xff]  ;;  %v220_v5 = vld [vmem:[#allocation2 + $0x70] sm:$0xff]  ;;  %v221_v8 = vld [vmem:[#allocation2 + $0x78] sm:$0xff] }
  0x1a   :  { %vm56_vm4 = vcmp.gt.f32.partialorder %v54_v12, 0.2  ;;  %v79_v15 = vmul.f32 0.2, %v54_v12  ;;  %vm57_vm5 = vcmp.gt.f32.partialorder %v55_v14, 0.2  ;;  %p370_p11 = por %p369_p10, %p368_p9 }
  0x1b   :  { %v58_v17 = vsel %vm56_vm4, 1.0, %v392_v4  ;;  %v80_v18 = vmul.f32 0.2, %v55_v14  ;;  %v59_v19 = vsel %vm57_vm5, 1.0, %v392_v4 }
  0x1c   :  { %vm77_vm6 = vcmp.gt.f32.partialorder %v58_v17, 0.0  ;;  %v81_v20 = vadd.f32 %v79_v15, %v75_v13  ;;  %v314_v21 = vpack.c.bf16 %v59_v19, %v58_v17  ;;  %vm78_vm7 = vcmp.gt.f32.partialorder %v59_v19, 0.0  ;;  %p371_p12 = pnand %p370_p11, %p364_p8 }
  0x1d   :  { %v82_v22 = vadd.f32 %v80_v18, %v76_v16 }
  0x1e   :  { %v83_v23 = vsel %vm77_vm6, %v75_v13, %v81_v20  ;;  %315 = vst [vmem:[#allocation5 + $0x8] sm:$0xff] %v314_v21  }
  0x1f   :  { %v84_v25 = vsel %vm78_vm7, %v76_v16, %v82_v22  ;;  %vm85_vm8 = vcmp.gt.f32.partialorder %v83_v23, 0.2  ;;  %v108_v26 = vmul.f32 0.2, %v83_v23 }
  0x20   :  { %vm86_vm9 = vcmp.gt.f32.partialorder %v84_v25, 0.2  ;;  %v87_v28 = vsel %vm85_vm8, 1.0, %v392_v4  ;;  %v109_v29 = vmul.f32 0.2, %v84_v25 }
  0x21   :  { %v88_v30 = vsel %vm86_vm9, 1.0, %v392_v4  ;;  %vm106_vm10 = vcmp.gt.f32.partialorder %v87_v28, 0.0  ;;  %v110_v31 = vadd.f32 %v108_v26, %v104_v24 }
  0x22   :  { %v317_v32 = vpack.c.bf16 %v88_v30, %v87_v28  ;;  %vm107_vm11 = vcmp.gt.f32.partialorder %v88_v30, 0.0  ;;  %v111_v33 = vadd.f32 %v109_v29, %v105_v27 }
  0x23   :  { %v112_v34 = vsel %vm106_vm10, %v104_v24, %v110_v31 }
  0x24   :  { %318 = vst [vmem:[#allocation5 + $0x10] sm:$0xff] %v317_v32   ;;  %v113_v36 = vsel %vm107_vm11, %v105_v27, %v111_v33  ;;  %vm114_vm12 = vcmp.gt.f32.partialorder %v112_v34, 0.2  ;;  %v137_v37 = vmul.f32 0.2, %v112_v34 }
  0x25   :  { %vm115_vm13 = vcmp.gt.f32.partialorder %v113_v36, 0.2  ;;  %v116_v39 = vsel %vm114_vm12, 1.0, %v392_v4  ;;  %v138_v40 = vmul.f32 0.2, %v113_v36 }
  0x26   :  { %v117_v41 = vsel %vm115_vm13, 1.0, %v392_v4  ;;  %vm135_vm14 = vcmp.gt.f32.partialorder %v116_v39, 0.0  ;;  %v139_v42 = vadd.f32 %v137_v37, %v133_v35 }
  0x27   :  { %v320_v43 = vpack.c.bf16 %v117_v41, %v116_v39  ;;  %vm136_vm15 = vcmp.gt.f32.partialorder %v117_v41, 0.0  ;;  %v140_v44 = vadd.f32 %v138_v40, %v134_v38 }
  0x28   :  { %v141_v45 = vsel %vm135_vm14, %v133_v35, %v139_v42 }
  0x29   :  { %321 = vst [vmem:[#allocation5 + $0x18] sm:$0xff] %v320_v43   ;;  %v142_v47 = vsel %vm136_vm15, %v134_v38, %v140_v44  ;;  %vm143_vm0 = vcmp.gt.f32.partialorder %v141_v45, 0.2  ;;  %v166_v48 = vmul.f32 0.2, %v141_v45 }
  0x2a   :  { %vm144_vm1 = vcmp.gt.f32.partialorder %v142_v47, 0.2  ;;  %v145_v50 = vsel %vm143_vm0, 1.0, %v392_v4  ;;  %v167_v51 = vmul.f32 0.2, %v142_v47 }
  0x2b   :  { %v146_v52 = vsel %vm144_vm1, 1.0, %v392_v4  ;;  %vm164_vm2 = vcmp.gt.f32.partialorder %v145_v50, 0.0  ;;  %v168_v53 = vadd.f32 %v166_v48, %v162_v46 }
  0x2c   :  { %v323_v54 = vpack.c.bf16 %v146_v52, %v145_v50  ;;  %vm165_vm3 = vcmp.gt.f32.partialorder %v146_v52, 0.0  ;;  %v169_v55 = vadd.f32 %v167_v51, %v163_v49 }
  0x2d   :  { %v170_v56 = vsel %vm164_vm2, %v162_v46, %v168_v53 }
  0x2e   :  { %324 = vst [vmem:[#allocation5 + $0x20] sm:$0xff] %v323_v54   ;;  %v171_v58 = vsel %vm165_vm3, %v163_v49, %v169_v55  ;;  %vm172_vm4 = vcmp.gt.f32.partialorder %v170_v56, 0.2  ;;  %v195_v59 = vmul.f32 0.2, %v170_v56 }
  0x2f   :  { %vm173_vm5 = vcmp.gt.f32.partialorder %v171_v58, 0.2  ;;  %v174_v61 = vsel %vm172_vm4, 1.0, %v392_v4  ;;  %v196_v62 = vmul.f32 0.2, %v171_v58 }
  0x30   :  { %v175_v63 = vsel %vm173_vm5, 1.0, %v392_v4  ;;  %vm193_vm6 = vcmp.gt.f32.partialorder %v174_v61, 0.0  ;;  %v197_v0 = vadd.f32 %v195_v59, %v191_v57 }
  0x31   :  { %v326_v1 = vpack.c.bf16 %v175_v63, %v174_v61  ;;  %vm194_vm7 = vcmp.gt.f32.partialorder %v175_v63, 0.0  ;;  %v198_v2 = vadd.f32 %v196_v62, %v192_v60 }
  0x32   :  { %v199_v3 = vsel %vm193_vm6, %v191_v57, %v197_v0 }
  0x33   :  { %327 = vst [vmem:[#allocation5 + $0x28] sm:$0xff] %v326_v1   ;;  %v200_v6 = vsel %vm194_vm7, %v192_v60, %v198_v2  ;;  %vm201_vm8 = vcmp.gt.f32.partialorder %v199_v3, 0.2  ;;  %v224_v7 = vmul.f32 0.2, %v199_v3 }
  0x34   :  { %vm202_vm9 = vcmp.gt.f32.partialorder %v200_v6, 0.2  ;;  %v203_v9 = vsel %vm201_vm8, 1.0, %v392_v4  ;;  %v225_v10 = vmul.f32 0.2, %v200_v6 }
  0x35   :  { %v204_v11 = vsel %vm202_vm9, 1.0, %v392_v4  ;;  %vm222_vm10 = vcmp.gt.f32.partialorder %v203_v9, 0.0  ;;  %v226_v12 = vadd.f32 %v224_v7, %v220_v5 }
  0x36   :  { %v329_v13 = vpack.c.bf16 %v204_v11, %v203_v9  ;;  %vm223_vm11 = vcmp.gt.f32.partialorder %v204_v11, 0.0  ;;  %v227_v14 = vadd.f32 %v225_v10, %v221_v8 }
  0x37   :  { %v228_v15 = vsel %vm222_vm10, %v220_v5, %v226_v12 }
  0x38   :  { %330 = vst [vmem:[#allocation5 + $0x30] sm:$0xff] %v329_v13   ;;  %v229_v16 = vsel %vm223_vm11, %v221_v8, %v227_v14  ;;  %vm230_vm12 = vcmp.gt.f32.partialorder %v228_v15, 0.2 }
  0x39   :  { %vm231_vm13 = vcmp.gt.f32.partialorder %v229_v16, 0.2  ;;  %v232_v17 = vsel %vm230_vm12, 1.0, %v392_v4 }
  0x3a   :  { %v233_v18 = vsel %vm231_vm13, 1.0, %v392_v4 }
  0x3b   :  { %v332_v19 = vpack.c.bf16 %v233_v18, %v232_v17 }
  0x3d   :  { %333 = vst [vmem:[#allocation5 + $0x38] sm:$0xff] %v332_v19  }
  0x3e   :  { %374 = shalt.err (!%p371_p12)
}
  0x3f   :  { %s375_s24 = scalar_lea.hbm %s447_s1, 1024 }
  0x40   :  { %p376_p13 = scmp.ne.s32.totalorder %s447_s1, %s375_s24  ;;  %p379_p0 = scmp.lt.u32.totalorder %s375_s24, %s447_s1 }
  0x42   :  { %p381_p1 = pnand %p379_p0, %p376_p13 }
  0x44   :  { %384 = shalt.err (!%p381_p1)
}
  0x45   :  { %s394_s29 = smov 64   ;;  %s395_s30 = smov 4  }
  0x46   :  { %258 = dma.vmem_to_hbm [thread:$0]  %s253_s20, 1024, %s447_s1, [#allocation4], %s394_s29, %s394_s29, %s395_s30  }
  0x47   :  { %387 = dma.done.wait [#allocation4], 1024  }
  0x48   :  { %388 = vsyncadd [#allocation4], 4294966272 }
  0x49   :  { %262 = vsyncpa [#allocation3], 1 }
  0x4a   :  { %263 = vsyncpa [#allocation4], 1 }

</bundles_post_ra>
